<compile_context>
chip_gen: v7x
topology: tpu7x:2x2x1
jax: 0.10.0
libtpu: 0.0.40
codegen_flags: <defaults>
</compile_context>

<pallas_src>
import random
from functools import partial

import numpy as np

import jax
import jax.numpy as jnp
from jax.experimental import pallas as pl
from jax.experimental.pallas import tpu as pltpu

SOS_token = 0
EOS_token = 1

_LANE = 128
_NEG_BIG = -1e30  # padded-logit filler (exp underflows to exactly 0 in f32)


def _round_up(x, m):
    return ((x + m - 1) // m) * m


# ---------------------------------------------------------------------------
# Fused decode-loop kernel (grid = (target_length,))
# ---------------------------------------------------------------------------
def _decode_loop_kernel(tok_sref, tf_sref,                      # SMEM (prefetch)
                        gate_tab_ref, gate_bias_ref, b_hn_ref,  # VMEM inputs
                        w_o_ref, b_o_ref,
                        out_ref,                                # VMEM output
                        pred_vmem, act_vmem, eos_vmem):         # VMEM scratch
    """One grid step = one reference decode iteration.

    tok_sref     : (1,)   int32   decoder_input (SOS, never updated by the ref)
    tf_sref      : (T,)   int32   teacher-force coin flips (1 = teacher force)
    gate_tab_ref : (V, 3*Hp)      relu(emb) @ [W_ir.T | W_iz.T | W_in.T], padded
    gate_bias_ref: (1, 3*Hp)      [b_ir+b_hr | b_iz+b_hz | b_in], padded
    b_hn_ref     : (1, Hp)        b_hn, padded
    w_o_ref      : (Hp, Op)       output Linear weight (transposed), padded
    b_o_ref      : (1, Op)        output Linear bias (padded cols = -1e30)
    out_ref      : (1, B, Op)     outputs[t] tile
    pred_vmem    : (8, Op)        cached log-softmax prediction (rows identical)
    act_vmem     : (1, Op)        "loop still live" flag, 1.0 / 0.0 (vector form)
    eos_vmem     : (1, Op)        "argmax == EOS" flag,   1.0 / 0.0 (vector form)
    """
    t = pl.program_id(0)
    Hp = b_hn_ref.shape[1]
    Vtab = gate_tab_ref.shape[0]
    B = out_ref.shape[1]
    Op = out_ref.shape[2]

    @pl.when(t == 0)
    def _():
        # ---- the single real decoder step (token & hidden never change) ----
        tok = tok_sref[0]
        # Row gather of the precomputed gate pre-activations via a tiny
        # one-hot MXU matmul; 8 identical rows keep sublanes aligned.
        onehot = (jax.lax.broadcasted_iota(jnp.int32, (8, Vtab), 1)
                  == tok).astype(jnp.float32)
        gates = jnp.dot(onehot, gate_tab_ref[...],
                        preferred_element_type=jnp.float32) + gate_bias_ref[...]
        # GRU with h_prev = 0:
        #   r = sigmoid(xWr + br), z = sigmoid(xWz + bz),
        #   n = tanh(xWn + bn_i + r*bn_h), h = (1 - z) * n
        r = jax.nn.sigmoid(gates[:, 0:Hp])
        z = jax.nn.sigmoid(gates[:, Hp:2 * Hp])
        n = jnp.tanh(gates[:, 2 * Hp:3 * Hp] + r * b_hn_ref[...])
        h = (1.0 - z) * n                                     # (8, Hp)

        # prediction = log_softmax(h @ W_o^T + b_o); padded cols are -1e30.
        logits = jnp.dot(h, w_o_ref[...],
                         preferred_element_type=jnp.float32) + b_o_ref[...]
        m = jnp.max(logits, axis=1, keepdims=True)
        shifted = logits - m
        lse = jnp.log(jnp.sum(jnp.exp(shifted), axis=1, keepdims=True))
        pred = shifted - lse                                  # (8, Op)
        pred_vmem[...] = pred

        # ---- on-device topk(1) / EOS check, kept entirely in vector form ----
        row = pred[0:1, :]
        mx = jnp.max(row, axis=1, keepdims=True)
        cols = jax.lax.broadcasted_iota(jnp.int32, (1, Op), 1)
        best = jnp.min(jnp.where(row == mx, cols, Op), axis=1, keepdims=True)
        eos_vmem[...] = jnp.broadcast_to(
            (best == EOS_token).astype(jnp.float32), (1, Op))
        act_vmem[...] = jnp.ones_like(act_vmem)

    # outputs[t] = decoder_output while the loop is live, zeros after the break
    active = act_vmem[...]                                    # (1, Op) 1.0/0.0
    out_ref[...] = jnp.broadcast_to(pred_vmem[0:1, :] * active, (1, B, Op))

    # reference: `if (not teacher_force) and topi == EOS_token: break`
    # -> deactivate every subsequent step.
    no_tf = (tf_sref[t] == 0).astype(jnp.float32)             # scalar
    act_vmem[...] = active * (1.0 - no_tf * eos_vmem[...])


@partial(jax.jit, static_argnames=("batch_size",))
def _fused_decode(tok, tf_mask, gate_tab, gate_bias, b_hn, w_o_t, b_o, *,
                  batch_size):
    """Whole decode loop in a single pallas_call (grid over target_length)."""
    T = tf_mask.shape[0]
    Vtab, three_hp = gate_tab.shape
    Hp = b_hn.shape[1]
    Op = b_o.shape[1]

    grid_spec = pltpu.PrefetchScalarGridSpec(
        num_scalar_prefetch=2,                   # tok, tf_mask -> SMEM
        grid=(T,),
        in_specs=[
            pl.BlockSpec((Vtab, three_hp), lambda t, tok, tf: (0, 0)),
            pl.BlockSpec((1, three_hp), lambda t, tok, tf: (0, 0)),
            pl.BlockSpec((1, Hp), lambda t, tok, tf: (0, 0)),
            pl.BlockSpec((Hp, Op), lambda t, tok, tf: (0, 0)),
            pl.BlockSpec((1, Op), lambda t, tok, tf: (0, 0)),
        ],
        out_specs=pl.BlockSpec((1, batch_size, Op),
                               lambda t, tok, tf: (t, 0, 0)),
        scratch_shapes=[
            pltpu.VMEM((8, Op), jnp.float32),    # cached prediction
            pltpu.VMEM((1, Op), jnp.float32),    # active flag
            pltpu.VMEM((1, Op), jnp.float32),    # argmax==EOS flag
        ],
    )
    return pl.pallas_call(
        _decode_loop_kernel,
        grid_spec=grid_spec,
        out_shape=jax.ShapeDtypeStruct((T, batch_size, Op), jnp.float32),
        compiler_params=pltpu.CompilerParams(
            # the t axis carries the early-exit state -> must stay sequential
            dimension_semantics=("arbitrary",)),
    )(tok, tf_mask, gate_tab, gate_bias, b_hn, w_o_t, b_o)


# ---------------------------------------------------------------------------
# Parameters & one-time packing
# ---------------------------------------------------------------------------
def init_decoder_params(key, dim_output, dim_hidden, dim_embed):
    """Deterministic synthetic parameters matching the PyTorch Decoder."""
    ks = jax.random.split(key, 7)
    s = 1.0 / jnp.sqrt(dim_hidden)
    return {
        "embedding": jax.random.normal(ks[0], (dim_output, dim_embed), jnp.float32),
        "gru_w_ih": jax.random.uniform(ks[1], (3 * dim_hidden, dim_embed),
                                       jnp.float32, -s, s),
        # gru_w_hh exists in the PyTorch module but multiplies a zero initial
        # hidden state in this forward, so it never influences the output.
        "gru_w_hh": jax.random.uniform(ks[2], (3 * dim_hidden, dim_hidden),
                                       jnp.float32, -s, s),
        "gru_b_ih": jax.random.uniform(ks[3], (3 * dim_hidden,), jnp.float32, -s, s),
        "gru_b_hh": jax.random.uniform(ks[4], (3 * dim_hidden,), jnp.float32, -s, s),
        "out_w": jax.random.uniform(ks[5], (dim_output, dim_hidden),
                                    jnp.float32, -s, s),
        "out_b": jax.random.uniform(ks[6], (dim_output,), jnp.float32, -s, s),
    }


def pack_params(params):
    """One-time packing: fold gate matmuls, pad H / vocab to 128 lanes.

    Precomputes relu(emb_table) @ [W_ir.T | W_iz.T | W_in.T] so the per-step
    GRU input transform is just a row gather + bias.  Exact (up to fp
    reassociation) ONLY because the reference Decoder runs its GRU with h0 = 0
    (it ignores the hidden state passed to it).  Padded logit columns carry
    -1e30 so log_softmax over the real columns is unchanged.
    """
    emb = params["embedding"]            # (V, E)
    w_ih = params["gru_w_ih"]            # (3H, E), row blocks [r; z; n]
    b_ih = params["gru_b_ih"]            # (3H,)
    b_hh = params["gru_b_hh"]            # (3H,)
    w_out = params["out_w"]              # (O, H)
    b_out = params["out_b"]              # (O,)
    V = emb.shape[0]
    H = w_ih.shape[0] // 3
    O = w_out.shape[0]
    Hp = _round_up(H, _LANE)
    Op = _round_up(O, _LANE)

    gate_real = jnp.maximum(emb, 0.0) @ w_ih.T               # (V, 3H)
    gate_tab = jnp.zeros((V, 3 * Hp), jnp.float32)
    for g in range(3):
        gate_tab = gate_tab.at[:, g * Hp:g * Hp + H].set(
            gate_real[:, g * H:(g + 1) * H])

    gate_bias = jnp.zeros((1, 3 * Hp), jnp.float32)
    gate_bias = gate_bias.at[:, 0:H].set((b_ih[0:H] + b_hh[0:H])[None, :])
    gate_bias = gate_bias.at[:, Hp:Hp + H].set(
        (b_ih[H:2 * H] + b_hh[H:2 * H])[None, :])
    gate_bias = gate_bias.at[:, 2 * Hp:2 * Hp + H].set(b_ih[2 * H:3 * H][None, :])

    b_hn = jnp.zeros((1, Hp), jnp.float32).at[:, 0:H].set(
        b_hh[2 * H:3 * H][None, :])
    w_o_t = jnp.zeros((Hp, Op), jnp.float32).at[0:H, 0:O].set(w_out.T)
    b_o = jnp.full((1, Op), _NEG_BIG, jnp.float32).at[:, 0:O].set(b_out[None, :])

    return {
        "gate_tab": gate_tab, "gate_bias": gate_bias, "b_hn": b_hn,
        "w_o_t": w_o_t, "b_o": b_o,
        "dim_output": O, "dim_hidden": H,
    }


# ---------------------------------------------------------------------------
# Seq2Seq.forward
# ---------------------------------------------------------------------------
def seq2seq_forward(src, target, packed, teacher_forcing_ratio=0.5,
                    tf_draws=None):
    """Mirrors Seq2Seq.forward; the whole decode loop is ONE Pallas launch."""
    target_length, batch_size = int(target.shape[0]), int(target.shape[1])
    assert target_length >= 1

    # TODO(synk): the Encoder module is not included in the provided source;
    # its hidden state is consumed only by the Decoder, which ignores it
    # (GRU called with h0 = 0), so `src` never affects the outputs.
    del src

    # Teacher-forcing coin flips come from the host RNG exactly like the
    # reference; they are drawn up-front so the loop stays a single launch
    # (extra draws past the break point never affect the returned outputs).
    if tf_draws is None:
        tf_draws = [random.random() for _ in range(target_length)]
    tf_mask = jnp.asarray(
        [1 if d < teacher_forcing_ratio else 0 for d in tf_draws], jnp.int32)
    tok = jnp.asarray([SOS_token], jnp.int32)

    out_padded = _fused_decode(tok, tf_mask,
                               packed["gate_tab"], packed["gate_bias"],
                               packed["b_hn"], packed["w_o_t"], packed["b_o"],
                               batch_size=batch_size)
    return out_padded[:, :, :packed["dim_output"]]            # (T, B, V)


# ---------------------------------------------------------------------------
# Plain-JAX / numpy references for validation
# ---------------------------------------------------------------------------
def _reference_decoder_step(token_ids, params):
    """Plain-JAX reference of the nn_models Decoder step (hidden ignored)."""
    emb, w_ih = params["embedding"], params["gru_w_ih"]
    b_ih, b_hh = params["gru_b_ih"], params["gru_b_hh"]
    w_out, b_out = params["out_w"], params["out_b"]
    H = w_ih.shape[0] // 3
    tok = jnp.asarray(token_ids).reshape(-1).astype(jnp.int32)
    x = jnp.maximum(emb[tok], 0.0)                            # relu(embedding)
    r = jax.nn.sigmoid(x @ w_ih[0:H].T + b_ih[0:H] + b_hh[0:H])
    z = jax.nn.sigmoid(x @ w_ih[H:2 * H].T + b_ih[H:2 * H] + b_hh[H:2 * H])
    n = jnp.tanh(x @ w_ih[2 * H:3 * H].T + b_ih[2 * H:3 * H]
                 + r * b_hh[2 * H:3 * H])
    h = (1.0 - z) * n
    logits = h @ w_out.T + b_out
    return jax.nn.log_softmax(logits, axis=1), h


def _reference_seq2seq(target, params, tf_mask):
    """Numpy reference of the full Seq2Seq decode loop (given tf coin flips)."""
    target_length, batch_size = target.shape
    V = params["out_w"].shape[0]
    pred, _ = _reference_decoder_step(jnp.asarray([SOS_token]), params)
    pred = np.asarray(pred)                                   # (1, V)
    outputs = np.zeros((target_length, batch_size, V), np.float32)
    for t in range(target_length):
        outputs[t] = np.broadcast_to(pred, (batch_size, V))
        topi = int(np.argmax(pred[0]))
        if (not bool(tf_mask[t])) and topi == EOS_token:
            break
    return outputs


# ---------------------------------------------------------------------------
if __name__ == "__main__":
    random.seed(0)
    dim_output, dim_hidden, dim_embed = 16, 32, 32
    target_length, seq_len, batch = 6, 5, 1

    key = jax.random.PRNGKey(0)
    k_params, k_src, k_tgt = jax.random.split(key, 3)
    params = init_decoder_params(k_params, dim_output, dim_hidden, dim_embed)
    packed = pack_params(params)                              # one-time packing
    jax.block_until_ready((packed["gate_tab"], packed["w_o_t"]))

    src = jax.random.randint(k_src, (seq_len, batch), 0, dim_output, jnp.int32)
    target = jax.random.randint(k_tgt, (target_length, batch), 0, dim_output,
                                jnp.int32)

    # --- run 1: host-RNG teacher-forcing flips (like the reference) ---
    tf_draws = [random.random() for _ in range(target_length)]
    out = seq2seq_forward(src, target, packed, teacher_forcing_ratio=0.5,
                          tf_draws=tf_draws)
    out = jax.block_until_ready(out)
    assert out.shape == (target_length, batch, dim_output)
    tf_mask = [1 if d < 0.5 else 0 for d in tf_draws]
    ref = _reference_seq2seq(np.asarray(target), params, tf_mask)
    assert jnp.allclose(out, ref, atol=1e-5), float(jnp.max(jnp.abs(out - ref)))
    assert jnp.allclose(jnp.sum(jnp.exp(out[0]), axis=-1), 1.0, atol=1e-5)

    # --- run 2: force argmax == EOS with no teacher forcing so the on-device
    #            early-exit path is exercised (later steps must stay zero) ---
    params_eos = dict(params)
    params_eos["out_b"] = params["out_b"].at[EOS_token].add(30.0)
    packed_eos = pack_params(params_eos)
    out_eos = seq2seq_forward(src, target, packed_eos, teacher_forcing_ratio=0.5,
                              tf_draws=[1.0] * target_length)  # never teacher-force
    out_eos = jax.block_until_ready(out_eos)
    ref_eos = _reference_seq2seq(np.asarray(target), params_eos,
                                 [0] * target_length)
    assert jnp.allclose(out_eos, ref_eos, atol=1e-4)
    assert bool(jnp.all(out_eos[1:] == 0.0))                  # break worked

    print("KERNEL_OK")
</pallas_src>

<mosaic_0001>
module attributes {stable_mosaic.version = 11 : i64} {
  func.func @_decode_loop_kernel(%arg0: i32, %arg1: memref<1xi32, #tpu.memory_space<smem>>, %arg2: memref<6xi32, #tpu.memory_space<smem>>, %arg3: memref<16x384xf32, #tpu.memory_space<vmem>>, %arg4: memref<1x384xf32, #tpu.memory_space<vmem>>, %arg5: memref<1x128xf32, #tpu.memory_space<vmem>>, %arg6: memref<128x128xf32, #tpu.memory_space<vmem>>, %arg7: memref<1x128xf32, #tpu.memory_space<vmem>>, %arg8: memref<1x1x128xf32, #tpu.memory_space<vmem>>, %arg9: memref<8x128xf32, #tpu.memory_space<vmem>>, %arg10: memref<1x128xf32, #tpu.memory_space<vmem>>, %arg11: memref<1x128xf32, #tpu.memory_space<vmem>>) attributes {dimension_semantics = [#tpu.dimension_semantics<arbitrary>], iteration_bounds = array<i64: 6>, scalar_prefetch = 2 : i64, scratch_operands = 3 : i64, tpu.core_type = #tpu.core_type<tc>, window_params = [{pipeline_mode = #tpu.pipeline_mode<synchronous>, transform_indices = @transform_0, window_bounds = array<i64: 16, 384>}, {pipeline_mode = #tpu.pipeline_mode<synchronous>, transform_indices = @transform_1, window_bounds = array<i64: 1, 384>}, {pipeline_mode = #tpu.pipeline_mode<synchronous>, transform_indices = @transform_2, window_bounds = array<i64: 1, 128>}, {pipeline_mode = #tpu.pipeline_mode<synchronous>, transform_indices = @transform_3, window_bounds = array<i64: 128, 128>}, {pipeline_mode = #tpu.pipeline_mode<synchronous>, transform_indices = @transform_4, window_bounds = array<i64: 1, 128>}, {transform_indices = @transform_5, window_bounds = array<i64: 1, 1, 128>}]} {
    %c0_i32 = arith.constant 0 : i32
    %0 = arith.cmpi eq, %arg0, %c0_i32 : i32
    %1 = arith.extui %0 : i1 to i32
    %c0_i32_0 = arith.constant 0 : i32
    %2 = arith.cmpi ne, %1, %c0_i32_0 : i32
    scf.if %2 {
      %c0_12 = arith.constant 0 : index
      %20 = memref.load %arg1[%c0_12] : memref<1xi32, #tpu.memory_space<smem>>
      %21 = tpu.iota {dimensions = array<i32: 1>} : vector<8x16xi32>
      %22 = vector.broadcast %20 : i32 to vector<8x16xi32>
      %23 = arith.cmpi eq, %21, %22 : vector<8x16xi32>
      %24 = arith.extui %23 : vector<8x16xi1> to vector<8x16xi32>
      %25 = arith.sitofp %24 : vector<8x16xi32> to vector<8x16xf32>
      %c0_13 = arith.constant 0 : index
      %c0_14 = arith.constant 0 : index
      %26 = vector.load %arg3[%c0_13, %c0_14] : memref<16x384xf32, #tpu.memory_space<vmem>>, vector<16x384xf32>
      %cst_15 = arith.constant dense<0.000000e+00> : vector<8x384xf32>
      %27 = tpu.matmul %25, %26, %cst_15 {dimension_numbers = #tpu.dot_dimension_numbers<[1], [0], [0], [1], [0, 0, 1, 1], [], []>} : vector<8x16xf32>, vector<16x384xf32>, vector<8x384xf32> -> vector<8x384xf32>
      %c0_16 = arith.constant 0 : index
      %c0_17 = arith.constant 0 : index
      %28 = vector.load %arg4[%c0_16, %c0_17] : memref<1x384xf32, #tpu.memory_space<vmem>>, vector<1x384xf32>
      %29 = vector.broadcast %28 : vector<1x384xf32> to vector<8x384xf32>
      %30 = arith.addf %27, %29 : vector<8x384xf32>
      %31 = vector.extract_strided_slice %30 {offsets = [0, 0], sizes = [8, 128], strides = [1, 1]} : vector<8x384xf32> to vector<8x128xf32>
      %32 = arith.negf %31 : vector<8x128xf32>
      %33 = math.exp %32 : vector<8x128xf32>
      %cst_18 = arith.constant 1.000000e+00 : f32
      %34 = vector.broadcast %cst_18 : f32 to vector<8x128xf32>
      %35 = arith.addf %34, %33 : vector<8x128xf32>
      %36 = arith.divf %34, %35 : vector<8x128xf32>
      %37 = vector.extract_strided_slice %30 {offsets = [0, 128], sizes = [8, 128], strides = [1, 1]} : vector<8x384xf32> to vector<8x128xf32>
      %38 = arith.negf %37 : vector<8x128xf32>
      %39 = math.exp %38 : vector<8x128xf32>
      %cst_19 = arith.constant 1.000000e+00 : f32
      %40 = vector.broadcast %cst_19 : f32 to vector<8x128xf32>
      %41 = arith.addf %40, %39 : vector<8x128xf32>
      %42 = arith.divf %40, %41 : vector<8x128xf32>
      %43 = vector.extract_strided_slice %30 {offsets = [0, 256], sizes = [8, 128], strides = [1, 1]} : vector<8x384xf32> to vector<8x128xf32>
      %c0_20 = arith.constant 0 : index
      %c0_21 = arith.constant 0 : index
      %44 = vector.load %arg5[%c0_20, %c0_21] : memref<1x128xf32, #tpu.memory_space<vmem>>, vector<1x128xf32>
      %45 = vector.broadcast %44 : vector<1x128xf32> to vector<8x128xf32>
      %46 = arith.mulf %36, %45 : vector<8x128xf32>
      %47 = arith.addf %43, %46 : vector<8x128xf32>
      %48 = math.tanh %47 : vector<8x128xf32>
      %cst_22 = arith.constant 1.000000e+00 : f32
      %49 = vector.broadcast %cst_22 : f32 to vector<8x128xf32>
      %50 = arith.subf %49, %42 : vector<8x128xf32>
      %51 = arith.mulf %50, %48 : vector<8x128xf32>
      %c0_23 = arith.constant 0 : index
      %c0_24 = arith.constant 0 : index
      %52 = vector.load %arg6[%c0_23, %c0_24] : memref<128x128xf32, #tpu.memory_space<vmem>>, vector<128x128xf32>
      %cst_25 = arith.constant dense<0.000000e+00> : vector<8x128xf32>
      %53 = tpu.matmul %51, %52, %cst_25 {dimension_numbers = #tpu.dot_dimension_numbers<[1], [0], [0], [1], [0, 0, 1, 1], [], []>} : vector<8x128xf32>, vector<128x128xf32>, vector<8x128xf32> -> vector<8x128xf32>
      %c0_26 = arith.constant 0 : index
      %c0_27 = arith.constant 0 : index
      %54 = vector.load %arg7[%c0_26, %c0_27] : memref<1x128xf32, #tpu.memory_space<vmem>>, vector<1x128xf32>
      %55 = vector.broadcast %54 : vector<1x128xf32> to vector<8x128xf32>
      %56 = arith.addf %53, %55 : vector<8x128xf32>
      %cst_28 = arith.constant dense<0xFF800000> : vector<8xf32>
      %57 = vector.multi_reduction <maximumf>, %56, %cst_28 [1] : vector<8x128xf32> to vector<8xf32>
      %58 = vector.shape_cast %57 : vector<8xf32> to vector<8x1xf32>
      %59 = vector.broadcast %58 : vector<8x1xf32> to vector<8x128xf32>
      %60 = arith.subf %56, %59 : vector<8x128xf32>
      %61 = math.exp %60 : vector<8x128xf32>
      %cst_29 = arith.constant dense<0.000000e+00> : vector<8xf32>
      %62 = vector.multi_reduction <add>, %61, %cst_29 [1] : vector<8x128xf32> to vector<8xf32>
      %63 = vector.shape_cast %62 : vector<8xf32> to vector<8x1xf32>
      %64 = math.log %63 : vector<8x1xf32>
      %65 = vector.broadcast %64 : vector<8x1xf32> to vector<8x128xf32>
      %66 = arith.subf %60, %65 : vector<8x128xf32>
      %c0_30 = arith.constant 0 : index
      %c0_31 = arith.constant 0 : index
      %67 = vector.load %arg9[%c0_30, %c0_31] : memref<8x128xf32, #tpu.memory_space<vmem>>, vector<8x128xf32>
      tpu.vector_store %arg9[%c0_30, %c0_31], %66 {strides = array<i32>} : memref<8x128xf32, #tpu.memory_space<vmem>>, vector<8x128xf32>,
      %68 = vector.extract_strided_slice %66 {offsets = [0, 0], sizes = [1, 128], strides = [1, 1]} : vector<8x128xf32> to vector<1x128xf32>
      %cst_32 = arith.constant dense<0xFF800000> : vector<1xf32>
      %69 = vector.multi_reduction <maximumf>, %68, %cst_32 [1] : vector<1x128xf32> to vector<1xf32>
      %70 = vector.shape_cast %69 : vector<1xf32> to vector<1x1xf32>
      %71 = tpu.iota {dimensions = array<i32: 1>} : vector<1x128xi32>
      %72 = vector.broadcast %70 : vector<1x1xf32> to vector<1x128xf32>
      %73 = arith.cmpf oeq, %68, %72 : vector<1x128xf32>
      %c128_i32 = arith.constant 128 : i32
      %74 = vector.broadcast %c128_i32 : i32 to vector<1x128xi32>
      %75 = arith.select %73, %71, %74 : vector<1x128xi1>, vector<1x128xi32>
      %cst_33 = arith.constant dense<2147483647> : vector<1xi32>
      %76 = vector.multi_reduction <minsi>, %75, %cst_33 [1] : vector<1x128xi32> to vector<1xi32>
      %77 = vector.shape_cast %76 : vector<1xi32> to vector<1x1xi32>
      %c1_i32 = arith.constant 1 : i32
      %78 = vector.broadcast %c1_i32 : i32 to vector<1x1xi32>
      %79 = arith.cmpi eq, %77, %78 : vector<1x1xi32>
      %80 = arith.extui %79 : vector<1x1xi1> to vector<1x1xi32>
      %81 = arith.sitofp %80 : vector<1x1xi32> to vector<1x1xf32>
      %82 = vector.shape_cast %81 : vector<1x1xf32> to vector<1x1xf32>
      %83 = vector.broadcast %82 : vector<1x1xf32> to vector<1x128xf32>
      %c0_34 = arith.constant 0 : index
      %c0_35 = arith.constant 0 : index
      %84 = vector.load %arg11[%c0_34, %c0_35] : memref<1x128xf32, #tpu.memory_space<vmem>>, vector<1x128xf32>
      tpu.vector_store %arg11[%c0_34, %c0_35], %83 {strides = array<i32>} : memref<1x128xf32, #tpu.memory_space<vmem>>, vector<1x128xf32>,
      %cst_36 = arith.constant 1.000000e+00 : f32
      %85 = vector.broadcast %cst_36 : f32 to vector<1x128xf32>
      %c0_37 = arith.constant 0 : index
      %c0_38 = arith.constant 0 : index
      %86 = vector.load %arg10[%c0_37, %c0_38] : memref<1x128xf32, #tpu.memory_space<vmem>>, vector<1x128xf32>
      tpu.vector_store %arg10[%c0_37, %c0_38], %85 {strides = array<i32>} : memref<1x128xf32, #tpu.memory_space<vmem>>, vector<1x128xf32>,
    } else {
    }
    %c0 = arith.constant 0 : index
    %c0_1 = arith.constant 0 : index
    %3 = vector.load %arg10[%c0, %c0_1] : memref<1x128xf32, #tpu.memory_space<vmem>>, vector<1x128xf32>
    %c0_2 = arith.constant 0 : index
    %c0_3 = arith.constant 0 : index
    %4 = vector.load %arg9[%c0_2, %c0_3] : memref<8x128xf32, #tpu.memory_space<vmem>>, vector<1x128xf32>
    %5 = arith.mulf %4, %3 : vector<1x128xf32>
    %6 = vector.shape_cast %5 : vector<1x128xf32> to vector<1x1x128xf32>
    %c0_4 = arith.constant 0 : index
    %c0_5 = arith.constant 0 : index
    %c0_6 = arith.constant 0 : index
    %7 = vector.load %arg8[%c0_4, %c0_5, %c0_6] : memref<1x1x128xf32, #tpu.memory_space<vmem>>, vector<1x1x128xf32>
    tpu.vector_store %arg8[%c0_4, %c0_5, %c0_6], %6 {strides = array<i32>} : memref<1x1x128xf32, #tpu.memory_space<vmem>>, vector<1x1x128xf32>,
    %8 = arith.index_cast %arg0 : i32 to index
    %9 = memref.load %arg2[%8] : memref<6xi32, #tpu.memory_space<smem>>
    %c0_i32_7 = arith.constant 0 : i32
    %10 = arith.cmpi eq, %9, %c0_i32_7 : i32
    %11 = arith.extui %10 : i1 to i32
    %12 = arith.sitofp %11 : i32 to f32
    %c0_8 = arith.constant 0 : index
    %c0_9 = arith.constant 0 : index
    %13 = vector.load %arg11[%c0_8, %c0_9] : memref<1x128xf32, #tpu.memory_space<vmem>>, vector<1x128xf32>
    %14 = vector.broadcast %12 : f32 to vector<1x128xf32>
    %15 = arith.mulf %14, %13 : vector<1x128xf32>
    %cst = arith.constant 1.000000e+00 : f32
    %16 = vector.broadcast %cst : f32 to vector<1x128xf32>
    %17 = arith.subf %16, %15 : vector<1x128xf32>
    %18 = arith.mulf %3, %17 : vector<1x128xf32>
    %c0_10 = arith.constant 0 : index
    %c0_11 = arith.constant 0 : index
    %19 = vector.load %arg10[%c0_10, %c0_11] : memref<1x128xf32, #tpu.memory_space<vmem>>, vector<1x128xf32>
    tpu.vector_store %arg10[%c0_10, %c0_11], %18 {strides = array<i32>} : memref<1x128xf32, #tpu.memory_space<vmem>>, vector<1x128xf32>,
    return
  }
  func.func @transform_0(%arg0: i32, %arg1: memref<1xi32, #tpu.memory_space<smem>>, %arg2: memref<6xi32, #tpu.memory_space<smem>>) -> (i32, i32) {
    %c0_i32 = arith.constant 0 : i32
    %c0_i32_0 = arith.constant 0 : i32
    %c0_i32_1 = arith.constant 0 : i32
    return %c0_i32, %c0_i32_0 : i32, i32
  }
  func.func @transform_1(%arg0: i32, %arg1: memref<1xi32, #tpu.memory_space<smem>>, %arg2: memref<6xi32, #tpu.memory_space<smem>>) -> (i32, i32) {
    %c0_i32 = arith.constant 0 : i32
    %c0_i32_0 = arith.constant 0 : i32
    %c0_i32_1 = arith.constant 0 : i32
    return %c0_i32, %c0_i32_0 : i32, i32
  }
  func.func @transform_2(%arg0: i32, %arg1: memref<1xi32, #tpu.memory_space<smem>>, %arg2: memref<6xi32, #tpu.memory_space<smem>>) -> (i32, i32) {
    %c0_i32 = arith.constant 0 : i32
    %c0_i32_0 = arith.constant 0 : i32
    %c0_i32_1 = arith.constant 0 : i32
    return %c0_i32, %c0_i32_0 : i32, i32
  }
  func.func @transform_3(%arg0: i32, %arg1: memref<1xi32, #tpu.memory_space<smem>>, %arg2: memref<6xi32, #tpu.memory_space<smem>>) -> (i32, i32) {
    %c0_i32 = arith.constant 0 : i32
    %c0_i32_0 = arith.constant 0 : i32
    %c0_i32_1 = arith.constant 0 : i32
    return %c0_i32, %c0_i32_0 : i32, i32
  }
  func.func @transform_4(%arg0: i32, %arg1: memref<1xi32, #tpu.memory_space<smem>>, %arg2: memref<6xi32, #tpu.memory_space<smem>>) -> (i32, i32) {
    %c0_i32 = arith.constant 0 : i32
    %c0_i32_0 = arith.constant 0 : i32
    %c0_i32_1 = arith.constant 0 : i32
    return %c0_i32, %c0_i32_0 : i32, i32
  }
  func.func @transform_5(%arg0: i32, %arg1: memref<1xi32, #tpu.memory_space<smem>>, %arg2: memref<6xi32, #tpu.memory_space<smem>>) -> (i32, i32, i32) {
    %c0_i32 = arith.constant 0 : i32
    %c0_i32_0 = arith.constant 0 : i32
    %c0_i32_1 = arith.constant 0 : i32
    return %arg0, %c0_i32, %c0_i32_0 : i32, i32, i32
  }
}

</mosaic_0001>

<bundles_post_ra>
// kernel: _fused_decode.1
= control target key start
LH: loop header
LB: loop body
LE: loop exit
PB: predicated region body
PF: predicated region fallthrough
CT: control target
= control target key end

     0   :  { %s1263_s0 = inlined_call_operand.<no memory space> [shape: s32[1], index: 0, kind: input, shape index: {}]   ;;  %s1264_s1 = inlined_call_operand.vmem [shape: s32[6], index: 1, kind: input, shape index: {}]   ;;  %s1265_s2 = inlined_call_operand.hbm [shape: f32[16,384], index: 2, kind: input, shape index: {}]   ;;  %s1266_s3 = inlined_call_operand.vmem [shape: f32[1,384], index: 3, kind: input, shape index: {}]   ;;  %s1267_s4 = inlined_call_operand.vmem [shape: f32[1,128], index: 4, kind: input, shape index: {}]   ;;  %s1268_s5 = inlined_call_operand.hbm [shape: f32[128,128], index: 5, kind: input, shape index: {}]   ;;  %s1269_s6 = inlined_call_operand.vmem [shape: f32[1,128], index: 6, kind: input, shape index: {}]   ;;  %s1270_s7 = inlined_call_operand.hbm [shape: f32[6,1,128], index: 7, kind: output, shape index: {}]  }
   0x1   :  { %12 = sst [smem:[#allocation6]] %s1263_s0  ;;  %s13_s28 = sshll.u32 %s1264_s1, 4  ;;  %s14_s28 = int_to_ptr.vmem [resolvable:$true] %s13_s28 }
   0x2   :  { %s861_s29 = scalar_lea.vmem %s14_s28, 16  ;;  %p866_p1 = scmp.lt.s32.totalorder %s14_s28, %s14_s28 }
   0x3   :  { %p862_p0 = scmp.ne.s32.totalorder %s14_s28, %s861_s29  ;;  %p867_p2 = scmp.lt.s32.totalorder %s861_s29, %s861_s29 }
   0x5   :  { %p868_p3 = por %p867_p2, %p866_p1 }
   0x7   :  { %p869_p4 = pnand %p868_p3, %p862_p0 }
   0x9   :  { %872 = shalt.err (!%p869_p4)  }
   0xa   :  { %s1003_s30 = smov [#allocation7]  }
   0xb   :  { %16 = dma.vmem_to_smem %s14_s28, 16, %s1003_s30, [#allocation5] }
   0xc   :  { %973 = dma.done.wait [#allocation5], 16 }
   0xd   :  { %974 = vsyncadd [#allocation5], 4294967280 }
   0xe   :  { %18 = sfence }
   0xf   :  { %19 = vsyncpa [#allocation9], 0 }
  0x10   :  { %20 = vsyncpa [#allocation12], 0 }
  0x11   :  { %21 = vsyncpa [#allocation10], 0 }
  0x12   :  { %23 = vsyncpa [#allocation10 + $0x1], 0  ;;  %s1061_s0 = smov 0   ;;  %s1063_s1 = smov 0  }
  0x13   :  { %s1065_s8 = smov 0   ;;  %s1067_s9 = smov 0  }
  0x14 LB: > { %s1082_s10 = sadd.s32 4294967295, %s1001_s9   ;;  %s666_s11 = sadd.s32 4294967294, %s1001_s9   ;;  %s1001_s9 = sphi %s1067_s9, %s1289_s9   ;;  %s997_s8 = sphi %s1065_s8, %s1288_s8   ;;  %s993_s1 = sphi %s1063_s1, %s1287_s1   ;;  %s989_s0 = sphi %s1061_s0, %s1286_s0  }
  0x15   : > { %s1086_s12 = sadd.s32 1, %s1001_s9   ;;  %s141_s13 = sadd.s32 1, %s997_s8 }
  0x16   : > { %s138_s14 = ssub.s32 %s1001_s9, %s1086_s12  ;;  %p151_p5 = scmp.ne.s32.totalorder %s997_s8, %s993_s1 }
  0x17   : > { %p139_p6 = scmp.eq.s32.totalorder %s138_s14, 0  ;;  %p152_p7 = scmp.eq.s32.totalorder %s1082_s10, 5 }
  0x18   : > { %p157_p8 = scmp.ne.s32.totalorder %s993_s1, %s989_s0  ;;  %p158_p9 = scmp.eq.s32.totalorder %s666_s11, 5 }
  0x19   : > { %s1097_s15 = scalar_select %p139_p6, %s997_s8, %s141_s13  }
  0x1a   : > { %p1099_p10 = por %p152_p7, %p151_p5  ;;  %p1103_p11 = por %p158_p9, %p157_p8 }
  0x1b   : > { %p667_p12 = scmp.ge.s32.totalorder %s1001_s9, 1  ;;  %p165_p13 = scmp.lt.s32.totalorder %s1001_s9, 7 }
  0x1c   : > { %s1274_s16 = scalar_select %p1099_p10, 1, 0 }
  0x1d   : > { %s1275_s17 = scalar_select %p1103_p11, 1, 0 }
  0x1e   : > { %p1271_p1 = scmp.eq.s32.totalorder %s1082_s10, 0  ;;  %p1111_p2 = pnand %p667_p12, %p165_p13 }
  0x1f   : > { %s1004_s19 = smov [#allocation8]   ;;  %s1005_s22 = smov [#allocation11]  }
  0x20   : > { %s1276_s18 = scalar_select %p1111_p2, 1, 0 }
  0x21   : > { %s177_s20 = sshll.u32 %s1004_s19, 4  ;;  %p788_p3 = pneg %p1111_p2  ;;  %s178_s20 = int_to_ptr.vmem [resolvable:$true] %s177_s20 }
  0x22   : > { %s196_s23 = sshll.u32 %s1005_s22, 4  ;;  %s873_s26 = scalar_lea.hbm %s1265_s2, 768  ;;  %s1123_s23 = int_to_ptr.vmem [resolvable:$true] %s196_s23 }
  0x23   : > { %p1119_p4 = pnand %p1271_p1, %p788_p3  ;;  %p874_p5 = scmp.ne.s32.totalorder %s1265_s2, %s873_s26 }
  0x24   : > { %p880_p9 = scmp.lt.u32.totalorder %s873_s26, %s1265_s2 }
  0x25   : > { %p875_p6 = pneg %p1119_p4 }
  0x27   : > { %p876_p7 = pnand %p875_p6, %p874_p5 }
  0x29   : > { %p877_p8 = pneg %p876_p7 }
  0x2b   : > { %p882_p12 = pnand %p880_p9, %p877_p8 }
  0x2d   : > { %885 = shalt.err (!%p882_p12)
}
  0x2e   : > { %s886_s11 = scalar_lea.vmem %s178_s20, 768  ;;  %p894_p1 = scmp.lt.s32.totalorder %s178_s20, %s178_s20 }
  0x2f   : > { %p887_p13 = scmp.ne.s32.totalorder %s178_s20, %s886_s11  ;;  %p895_p11 = scmp.lt.s32.totalorder %s886_s11, %s886_s11 }
  0x31   : > { %p889_p3 = pnand %p887_p13, %p875_p6  ;;  %p896_p10 = por %p895_p11, %p894_p1 }
  0x33   : > { %p890_p0 = pneg %p889_p3 }
  0x35   : > { %p897_p2 = pnand %p896_p10, %p890_p0 }
  0x37   : > { %900 = shalt.err (!%p897_p2)
}
  0x38   : > { %s1006_s13 = smov 384   ;;  %s1007_s14 = smov 24  }
  0x39   : > { %791 = dma.hbm_to_vmem [thread:$0]  (!%p1119_p4), %s1265_s2, 768, %s178_s20, [#allocation9], %s1006_s13, %s1006_s13, %s1007_s14  }
  0x3a   : > { %s901_s26 = scalar_lea.hbm %s1268_s5, 2048 }
  0x3b   : > { %p902_p5 = scmp.ne.s32.totalorder %s1268_s5, %s901_s26  ;;  %p908_p0 = scmp.lt.u32.totalorder %s901_s26, %s1268_s5 }
  0x3d   : > { %p904_p10 = pnand %p902_p5, %p875_p6 }
  0x3f   : > { %p905_p11 = pneg %p904_p10 }
  0x41   : > { %p910_p1 = pnand %p908_p0, %p905_p11 }
  0x43   : > { %913 = shalt.err (!%p910_p1)
}
  0x44   : > { %s914_s20 = scalar_lea.vmem %s1123_s23, 2048  ;;  %p922_p9 = scmp.lt.s32.totalorder %s1123_s23, %s1123_s23 }
  0x45   : > { %p915_p2 = scmp.ne.s32.totalorder %s1123_s23, %s914_s20  ;;  %p923_p12 = scmp.lt.s32.totalorder %s914_s20, %s914_s20 }
  0x47   : > { %p917_p7 = pnand %p915_p2, %p875_p6  ;;  %p924_p13 = por %p923_p12, %p922_p9 }
  0x49   : > { %p918_p8 = pneg %p917_p7 }
  0x4b   : > { %p925_p3 = pnand %p924_p13, %p918_p8 }
  0x4d   : > { %928 = shalt.err (!%p925_p3)
}
  0x4e   : > { %s1008_s11 = smov 128   ;;  %s1009_s13 = smov 8  }
  0x4f   : > { %794 = dma.hbm_to_vmem [thread:$0]  (!%p1119_p4), %s1268_s5, 2048, %s1123_s23, [#allocation12], %s1008_s11, %s1008_s11, %s1009_s13  }
  0x50   : > { %p1278_p5 = scmp.ne.s32.totalorder %s1276_s18, 0 }
  0x51   : > { %p1279_p6 = scmp.eq.s32.totalorder (!%p1278_p5), %s1082_s10, 0 }
  0x52   : > { %215 = sbr.rel (%p1278_p5) target bundleno = 1371 (0x55b), region = 40 }
  0x59   : > { %976 = dma.done.wait (%p1279_p6), [#allocation9], 768   ;;  %p1280_p10 = pmov %p1279_p6 }
  0x5a   : > { %p1281_p11 = pmov %p1279_p6 }
  0x5b   : > { %978 = vsyncadd (%p1280_p10), [#allocation9], 4294966528 }
  0x5c   : > { %980 = dma.done.wait (%p1281_p11), [#allocation12], 2048   ;;  %p1282_p0 = pmov %p1279_p6 }
  0x5d   : > { %s239_s21 = sand.u32 1, %s993_s1   ;;  %p1283_p4 = scmp.ne.s32.totalorder %s1082_s10, 0 }
  0x5e   : > { %982 = vsyncadd (%p1282_p0), [#allocation12], 4294965248  ;;  %s1185_s23 = scalar_lea.vmem [#allocation13], %s239_s21  ;;  %v253_v0 = vld [vmem:[#allocation8 + $0x8] sm:$0xff] (!%p1283_p4)  ;;  %v256_v1 = vld [vmem:[#allocation8 + $0x20] sm:$0xff] (!%p1283_p4)  ;;  %s245_s18 = sld [smem:[#allocation6]] (!%p1283_p4)  ;;  %v246_v3 = vlaneseq (!%p1283_p4) }
  0x5f   : > { %244 = sbr.rel (%p1283_p4) target bundleno = 1331 (0x533), region = 52  ;;  %v252_v2 = vld [vmem:[#allocation8] sm:$0xff] (!%p1283_p4)  ;;  %v747_v4 = vpack.c.bf16 (!%p1283_p4), %v256_v1, %v253_v0  ;;  %v255_v5 = vld [vmem:[#allocation8 + $0x18] sm:$0xff] (!%p1283_p4)  ;;  %v1010_v6 = vmov (!%p1283_p4), 0.0   ;;  %v1011_v8 = vmov (!%p1283_p4), 0.0|0.0   ;;  %vm1012_vm0 = vmmov (!%p1283_p4), 0  }
  0x60   : > { %343 = vmatprep.mubr.f32.mxu1 (!%p1283_p4), %v1010_v6  ;;  %v749_v7 = vpack.c.bf16 (!%p1283_p4), %v255_v5, %v252_v2  ;;  %754 = vmatprep.subr.bf16.mxu0 (!%p1283_p4), %v1011_v8  ;;  %v1192_v9 = vand.u32 (!%p1283_p4), 127, %v246_v3  ;;  %v254_v10 = vld [vmem:[#allocation8 + $0x10] sm:$0xff] (!%p1283_p4)  ;;  %v257_v11 = vld [vmem:[#allocation8 + $0x28] sm:$0xff] (!%p1283_p4)  ;;  %vm275_vm1 = vcmask (!%p1283_p4), 130048   ;;  %v445_v16 = vld [vmem:[#allocation11 + $0x8] sm:$0xff] (!%p1283_p4)  ;;  %v261_v39 = vshrl.u32 (!%p1283_p4), %v246_v3, 7 }
  0x61   : > { %744 = vmatprep.mubr.msk.f32.mxu0 (!%p1283_p4), %vm1012_vm0, %v1010_v6  ;;  %748 = vmatprep.subr.bf16.mxu1 (!%p1283_p4), %v747_v4  ;;  %v752_v13 = vpack.c.bf16 (!%p1283_p4), %v257_v11, %v254_v10  ;;  %v444_v15 = vld [vmem:[#allocation11] sm:$0xff] (!%p1283_p4)  ;;  %v446_v18 = vld [vmem:[#allocation11 + $0x10] sm:$0xff] (!%p1283_p4)  ;;  %v447_v19 = vld [vmem:[#allocation11 + $0x18] sm:$0xff] (!%p1283_p4)  ;;  %vm548_vm3 = vcmask (!%p1283_p4), 1040384  }
  0x62   : > { %750 = vmatpush1.bf16.msra.mxu1 (!%p1283_p4), %v749_v7  ;;  %v755_v17 = vpack.c.bf16 (!%p1283_p4), %v445_v16, %v444_v15  ;;  %v758_v20 = vpack.c.bf16 (!%p1283_p4), %v447_v19, %v446_v18  ;;  %v448_v21 = vld [vmem:[#allocation11 + $0x20] sm:$0xff] (!%p1283_p4)  ;;  %v449_v22 = vld [vmem:[#allocation11 + $0x28] sm:$0xff] (!%p1283_p4)  ;;  %v450_v24 = vld [vmem:[#allocation11 + $0x30] sm:$0xff] (!%p1283_p4)  ;;  %v262_v40 = vsub.s32 (!%p1283_p4), 0, %v261_v39  ;;  %v266_v42 = vsub.s32 (!%p1283_p4), 1, %v261_v39 }
  0x63   : > { %751 = vmatprep.subr.bf16.mxu1 (!%p1283_p4), %v1011_v8  ;;  %v761_v23 = vpack.c.bf16 (!%p1283_p4), %v449_v22, %v448_v21  ;;  %v451_v25 = vld [vmem:[#allocation11 + $0x38] sm:$0xff] (!%p1283_p4)  ;;  %v452_v27 = vld [vmem:[#allocation11 + $0x40] sm:$0xff] (!%p1283_p4)  ;;  %v453_v28 = vld [vmem:[#allocation11 + $0x48] sm:$0xff] (!%p1283_p4)  ;;  %v270_v44 = vsub.s32 (!%p1283_p4), 2, %v261_v39 }
  0x64   : > { %v248_v12 = vstv (!%p1283_p4), %s245_s18  ;;  %756 = vmatpush3.bf16.msra.mxu0 (!%p1283_p4), %v755_v17  ;;  %v764_v26 = vpack.c.bf16 (!%p1283_p4), %v451_v25, %v450_v24  ;;  %v767_v29 = vpack.c.bf16 (!%p1283_p4), %v453_v28, %v452_v27  ;;  %v454_v30 = vld [vmem:[#allocation11 + $0x50] sm:$0xff] (!%p1283_p4)  ;;  %v455_v31 = vld [vmem:[#allocation11 + $0x58] sm:$0xff] (!%p1283_p4)  ;;  %v456_v33 = vld [vmem:[#allocation11 + $0x60] sm:$0xff] (!%p1283_p4)  ;;  %v1013_v28 = vmov (!%p1283_p4), 1.0  }
  0x65   : > { %vm249_vm2 = vcmp.eq.s32.totalorder (!%p1283_p4), %v1192_v9, %v248_v12  ;;  %757 = vmatprep.subr.bf16.mxu0 (!%p1283_p4), %v1011_v8  ;;  %v770_v32 = vpack.c.bf16 (!%p1283_p4), %v455_v31, %v454_v30  ;;  %v457_v34 = vld [vmem:[#allocation11 + $0x68] sm:$0xff] (!%p1283_p4)  ;;  %v458_v36 = vld [vmem:[#allocation11 + $0x70] sm:$0xff] (!%p1283_p4)  ;;  %v459_v37 = vld [vmem:[#allocation11 + $0x78] sm:$0xff] (!%p1283_p4)  ;;  %573 = vst [vmem:[#allocation3] sm:$0x1] (!%p1283_p4), %v1013_v28 }
  0x66   : > { %v674_v14 = vsel %vm249_vm2, 1.0, %v1010_v6  ;;  %v773_v35 = vpack.c.bf16 %v457_v34, %v456_v33  ;;  %v776_v38 = vpack.c.bf16 %v459_v37, %v458_v36  ;;  %v258_v41 = vld [vmem:[%s1266_s3] sm:$0x7] }
  0x67   : > { %675 = vmatmul.mubr.msk.f32.vlgmr.msra.gmra.mrb[0].mxu1 %vm275_vm1, %v674_v14  ;;  %v263_v43 = vrot.slane %v258_v41, %v262_v40  ;;  %v267_v45 = vrot.slane %v258_v41, %v266_v42  ;;  %v271_v49 = vrot.slane %v258_v41, %v270_v44  ;;  %v679_v60 = vld [vmem:[%s1267_s4] ss:$0 sm:$0xff] }
  0x68   : > { %753 = vmatpush3.bf16.msra.mxu1 %v752_v13  ;;  %709 = vmatprep.mubr.msk.f32.mxu1 %vm1012_vm0, %v1010_v6  ;;  %v680_v4 = vld [vmem:[%s1269_s6] ss:$0 sm:$0xff] }
  0x69   : > { %759 = vmatpush3.bf16.msra.mxu0 %v758_v20 }
  0x6a   : > { %760 = vmatprep.subr.bf16.mxu0 %v1011_v8 }
  0x6b   : > { %710 = vmatmul.mubr.msk.f32.vlgmr.msra.gmra.mrb[2].mxu1 %vm275_vm1, %v674_v14 }
  0x6d   : > { %762 = vmatpush3.bf16.msra.mxu0 %v761_v23 }
  0x6e   : > { %763 = vmatprep.subr.bf16.mxu0 %v1011_v8 }
  0x71   : > { %765 = vmatpush3.bf16.msra.mxu0 %v764_v26 }
  0x72   : > { %766 = vmatprep.subr.bf16.mxu0 %v1011_v8 }
  0x75   : > { %768 = vmatpush3.bf16.msra.mxu0 %v767_v29 }
  0x76   : > { %769 = vmatprep.subr.bf16.mxu0 %v1011_v8 }
  0x79   : > { %771 = vmatpush3.bf16.msra.mxu0 %v770_v32 }
  0x7a   : > { %772 = vmatprep.subr.bf16.mxu0 %v1011_v8 }
  0x7d   : > { %774 = vmatpush3.bf16.msra.mxu0 %v773_v35 }
  0x7e   : > { %775 = vmatprep.subr.bf16.mxu0 %v1011_v8 }
  0x81   : > { %777 = vmatpush3.bf16.msra.mxu0 %v776_v38 }
 0x13a   : > { %v345_v46 = vpop.f32.mrb[0].mxu1 }
 0x13b   : > { %v346_v47 = vadd.f32 %v345_v46, %v263_v43  ;;  %v347_v48 = vpop.f32.mrb[1].mxu1 }
 0x13c   : > { %v348_v50 = vadd.f32 %v347_v48, %v267_v45 }
 0x13d   : > { %v677_v51 = vmul.f32 -1.442695, %v346_v47 }
 0x13e   : > { %v416_v52 = vpop.f32.mrb[2].mxu1  ;;  %v678_v55 = vmul.f32 -1.442695, %v348_v50 }
 0x13f   : > { %847 = vpow2.f32 %v677_v51  ;;  %v417_v53 = vadd.f32 %v416_v52, %v271_v49  ;;  %v711_v54 = vpop.f32.mrb[3].mxu1 }
 0x140   : > { %849 = vpow2.f32 %v678_v55 }
 0x149   : > { %v848_v56 = vpop.eup %847 }
 0x14a   : > { %v423_v57 = vadd.f32 1.0, %v848_v56  ;;  %v850_v58 = vpop.eup %849 }
 0x14b   : > { %v429_v59 = vadd.f32 1.0, %v850_v58 }
 0x14c   : > { %851 = vrcp.f32 %v423_v57 }
 0x14d   : > { %853 = vrcp.f32 %v429_v59 }
 0x156   : > { %v852_v61 = vpop.eup %851 }
 0x157   : > { %v439_v62 = vmul.f32 %v852_v61, %v679_v60  ;;  %v854_v0 = vpop.eup %853 }
 0x158   : > { %v442_v1 = vsub.f32 1.0, %v854_v0 }
 0x159   : > { %v440_v63 = vadd.f32 %v439_v62, %v417_v53 }
 0x15b   : > { %855 = vtanh.f32 %v440_v63 }
 0x165   : > { %v856_v2 = vpop.eup %855 }
 0x166   : > { %v443_v3 = vmul.f32 %v856_v2, %v442_v1 }
 0x168   : > { %745 = vmatmul.mubr.f32.vlgmr.msra.gmra.mrb[0].mxu0 %v443_v3 }
 0x23b   : > { %v533_v5 = vpop.f32.mrb[0].mxu0 }
 0x23c   : > { %v534_v7 = vadd.f32 %v680_v4, %v533_v5  ;;  %v746_v8 = vpop.f32.mrb[1].mxu0 }
 0x23e   : > { %537 = vmax.xlane.f32.xlu0 %v534_v7 }
 0x2cb   : > { %v538_v10 = vpop.xlane.xlu0 %537 }
 0x2cc   : > { %v539_v11 = vsub.f32 %v534_v7, %v538_v10 }
 0x2ce   : > { %v540_v12 = vmul.f32 1.442695, %v539_v11 }
 0x2d0   : > { %857 = vpow2.f32 %v540_v12 }
 0x2da   : > { %v858_v13 = vpop.eup %857 }
 0x2db   : > { %542 = vadd.xlane.f32.xlu0 %v858_v13 }
 0x368   : > { %v543_v14 = vpop.xlane.xlu0 %542 }
 0x369   : > { %859 = vlog2.f32 %v543_v14 }
 0x373   : > { %v860_v15 = vpop.eup %859 }
 0x374   : > { %v545_v16 = vmul.f32 0.6931472, %v860_v15 }
 0x376   : > { %v546_v17 = vsub.f32 %v539_v11, %v545_v16 }
 0x378   : > { %v549_v18 = vsel %vm548_vm3, %v546_v17, -inf  ;;  %547 = vst [vmem:[#allocation2] sm:$0xff] %v546_v17 }
 0x379   : > { %550 = vmax.xlane.f32.xlu1 %v549_v18 }
 0x406   : > { %v551_v19 = vpop.xlane.xlu1 %550 }
 0x407   : > { %vm552_vm4 = vcmp.eq.f32.partialorder %v546_v17, %v551_v19 }
 0x408   : > { %v553_v20 = vsel %vm552_vm4, %v1192_v9, 128 }
 0x409   : > { %v554_v21 = vsel %vm548_vm3, %v553_v20, 2147483647 }
 0x40a   : > { %v556_v22 = vshra.s32 %v554_v21, 16  ;;  %v555_v24 = vand.u32 65535, %v554_v21 }
 0x40c   : > { %v558_v23 = vcvt.s32.f32 %v556_v22  ;;  %v557_v26 = vcvt.s32.f32 %v555_v24 }
 0x40e   : > { %559 = vmin.xlane.f32.xlu1 %v558_v23 }
 0x49b   : > { %v560_v25 = vpop.xlane.xlu1 %559 }
 0x49c   : > { %vm561_vm5 = vcmp.eq.f32.partialorder %v558_v23, %v560_v25  ;;  %v566_v29 = vcvt.f32.s32 %v560_v25 }
 0x49d   : > { %v562_v27 = vsel %vm561_vm5, %v557_v26, inf }
 0x49e   : > { %563 = vmin.xlane.f32.xlu0 %v562_v27  ;;  %v567_v31 = vshll.u32 %v566_v29, 16 }
 0x52b   : > { %v564_v30 = vpop.xlane.xlu0 %563 }
 0x52c   : > { %v565_v32 = vcvt.f32.s32 %v564_v30 }
 0x52e   : > { %v568_v33 = vadd.s32 %v567_v31, %v565_v32 }
 0x530   : > { %vm569_vm6 = vcmp.eq.s32.totalorder %v568_v33, 1 }
 0x531   : > { %v681_v9 = vsel %vm569_vm6, 1.0, %v1010_v6 }
 0x532   : > { %572 = vst [vmem:[#allocation4] sm:$0x1] %v681_v9 }
 0x533 PF: > { %v575_v35 = vld [vmem:[#allocation2] sm:$0x1]  ;;  %s1210_s29 = sld [smem:[#allocation7 + %s1082_s10]]  ;;  %s682_s30 = sshll.u32 %s1082_s10, 4 }
 0x534   : > { %s601_s20 = sshll.u32 %s1185_s23, 4  ;;  %s1217_s14 = scalar_lea.hbm %s1270_s7, %s682_s30  ;;  %s1219_s20 = int_to_ptr.vmem [resolvable:$true] %s601_s20 }
 0x535   : > { %s589_s19 = scalar_lea.sflag [#allocation10], %s239_s21  ;;  %s929_s18 = scalar_lea.vmem %s1219_s20, 16 }
 0x536   : > { %p930_p1 = scmp.ne.s32.totalorder %s1219_s20, %s929_s18  ;;  %p1284_p2 = scmp.ne.s32.totalorder %s1274_s16, 0 }
 0x537   : > { %s1014_s10 = smov [#allocation13]  }
 0x538   : > { %p931_p7 = pnand %p930_p1, %p1284_p2  ;;  %s933_s22 = sshll.u32 %s1014_s10, 4  ;;  %s934_s22 = int_to_ptr.vmem [resolvable:$false] %s933_s22 }
 0x539   : > { %v574_v34 = vld [vmem:[#allocation3] sm:$0x1]  ;;  %s935_s24 = scalar_lea.vmem %s934_s22, 32  ;;  %p936_p9 = scmp.lt.s32.totalorder %s1219_s20, %s934_s22 }
 0x53a   : > { %v576_v36 = vmul.f32 %v575_v35, %v574_v34  ;;  %p932_p8 = pneg %p931_p7  ;;  %p937_p12 = scmp.lt.s32.totalorder %s935_s24, %s929_s18 }
 0x53c   : > { %577 = vst [vmem:[%s1185_s23] sm:$0x1] %v576_v36  ;;  %p938_p13 = por %p937_p12, %p936_p9 }
 0x53e   : > { %p939_p3 = pnand %p938_p13, %p932_p8 }
 0x540   : > { %942 = shalt.err (!%p939_p3)
}
 0x541   : > { %s943_s21 = scalar_lea.hbm %s1217_s14, 16  ;;  %s947_s26 = scalar_lea.hbm %s1270_s7, 96 }
 0x542   : > { %p944_p5 = scmp.ne.s32.totalorder %s1217_s14, %s943_s21  ;;  %p948_p11 = scmp.lt.u32.totalorder %s1217_s14, %s1270_s7 }
 0x543   : > { %p949_p0 = scmp.lt.u32.totalorder %s947_s26, %s943_s21  ;;  %p951_p1 = scmp.lt.u32.totalorder %s943_s21, %s1217_s14 }
 0x544   : > { %p945_p6 = pnand %p944_p5, %p1284_p2 }
 0x545   : > { %p950_p4 = por %p949_p0, %p948_p11 }
 0x546   : > { %p946_p10 = pneg %p945_p6 }
 0x547   : > { %p952_p7 = por %p951_p1, %p950_p4 }
 0x549   : > { %p953_p8 = pnand %p952_p7, %p946_p10 }
 0x54b   : > { %956 = shalt.err (!%p953_p8)
}
 0x54c   : > { %786 = dma.vmem_to_hbm [thread:$0]  (%p1284_p2), %s1219_s20, 16, %s1217_s14, %s589_s19   ;;  %v582_v6 = vld [vmem:[#allocation4] sm:$0x1] }
 0x54d   : > { %p579_p9 = scmp.eq.s32.totalorder %s1210_s29, 0 }
 0x54f   : > { %s580_s30 = scalar_select %p579_p9, 1, 0 }
 0x551   : > { %s581_s11 = scvt.s32.f32 %s580_s30 }
 0x553   : > { %v583_v37 = vstv %s581_s11 }
 0x554   : > { %v584_v38 = vmul.f32 %v583_v37, %v582_v6 }
 0x556   : > { %v585_v39 = vsub.f32 1.0, %v584_v38 }
 0x558   : > { %v586_v40 = vmul.f32 %v585_v39, %v574_v34 }
 0x55a   : > { %587 = vst [vmem:[#allocation3] sm:$0x1] %v586_v40 }
 0x55b PF: > { %p803_p12 = scmp.ge.s32.totalorder %s1001_s9, 2  ;;  %s613_s13 = sand.u32 1, %s989_s0  }
 0x55c   : > { %p1285_p13 = scmp.ne.s32.totalorder %s1275_s17, 0  ;;  %s614_s16 = scalar_lea.sflag [#allocation10], %s613_s13 }
 0x55e   : > { %p796_p3 = pnand %p803_p12, %p1285_p13 }
 0x560   : > { %984 = dma.done.wait (!%p796_p3), %s614_s16, 16  }
 0x561   : > { %986 = vsyncadd (!%p796_p3), %s614_s16, 4294967280  ;;  %p26_p2 = scmp.ge.s32.totalorder %s1086_s12, 8   ;;  %s1286_s0 = smov %s993_s1 }
 0x562   : > { %s1287_s1 = smov %s997_s8  ;;  %s1288_s8 = smov %s1097_s15 }
 0x563   : > { %s1289_s9 = smov %s1086_s12  ;;  %28 = sbr.rel (!%p26_p2) target bundleno = 20 (0x14), region = 85 }
 0x56a   :  { %618 = vsyncpa [#allocation9], 1 }
 0x56b   :  { %620 = vsyncpa [#allocation9 + $0x1], 1 }
 0x56c   :  { %621 = vsyncpa [#allocation12], 1 }
 0x56d   :  { %622 = vsyncpa [#allocation10], 1 }
 0x56e   :  { %624 = vsyncpa [#allocation10 + $0x1], 1 }

</bundles_post_ra>
